<compile_context>
chip_gen: v5e
topology: v5e:2x2
jax: 0.10.0
libtpu: 0.0.40
codegen_flags: <defaults>
</compile_context>

<pallas_src>
import functools

import jax
import jax.numpy as jnp
from jax import lax
from jax.experimental import pallas as pl
from jax.experimental.pallas import tpu as pltpu


def _round_up(x, m):
    return ((x + m - 1) // m) * m


def _sublane_packing(dtype):
    """Rows per vreg sublane group: 8 for 32-bit, 16 for bf16, 32 for 8-bit."""
    itemsize = jnp.dtype(dtype).itemsize
    return max(8, 32 // max(1, itemsize))


def _vmem_capacity_bytes():
    """Physical VMEM per core (128 MiB on v4/v5e/v5p/v6e, 64 MiB on v7x)."""
    try:
        return int(pltpu.get_tpu_info().vmem_capacity_bytes)
    except Exception:
        pass
    try:
        kind = jax.devices()[0].device_kind.lower()
        if "v7" in kind:
            return 64 << 20
        if any(t in kind for t in ("v4", "v5", "v6")):
            return 128 << 20
    except Exception:
        pass
    return 64 << 20  # conservative default (v7x-sized)


def _rmsnorm_gate_linear_kernel(*refs, eps, gate_chunk, has_bias):
    # refs: x (tm,N), o (tm,N), norm_w (1,N), weight (tn,N), [bias (1,tn)],
    #       out (tm,tn), y scratch (tm,N) in the matmul dtype.
    if has_bias:
        x_ref, o_ref, nw_ref, lw_ref, lb_ref, out_ref, y_ref = refs
    else:
        x_ref, o_ref, nw_ref, lw_ref, out_ref, y_ref = refs
        lb_ref = None

    # Gated-normalized activation is computed once per row tile (j == 0) into
    # VMEM scratch and reused by every output-column tile.
    @pl.when(pl.program_id(1) == 0)
    def _():
        nw = nw_ref[...].astype(jnp.float32)

        def gate_rows(row0):
            x = x_ref[pl.ds(row0, gate_chunk), :].astype(jnp.float32)
            o = o_ref[pl.ds(row0, gate_chunk), :].astype(jnp.float32)
            ms = jnp.mean(x * x, axis=-1, keepdims=True)     # RMS stats in fp32
            y = (x * lax.rsqrt(ms + eps)) * nw                # elementwise affine
            y = y * (o * jax.nn.sigmoid(o))                   # swish gate
            y_ref[pl.ds(row0, gate_chunk), :] = y.astype(y_ref.dtype)

        n_chunks = y_ref.shape[0] // gate_chunk
        if n_chunks == 1:
            gate_rows(0)
        else:
            def body(c, carry):
                gate_rows(pl.multiple_of(c * gate_chunk, gate_chunk))
                return carry
            lax.fori_loop(0, n_chunks, body, 0)

    # Fused projection on the MXU, fp32 accumulation.  Weight tile is (tn, N),
    # contract the last dims of both operands (y @ w.T).
    acc = lax.dot_general(
        y_ref[...], lw_ref[...],
        dimension_numbers=(((1,), (1,)), ((), ())),
        preferred_element_type=jnp.float32,
    )
    if has_bias:
        acc = acc + lb_ref[...].astype(jnp.float32)
    out_ref[...] = acc.astype(out_ref.dtype)


def _choose_tiles(M, N, N_out_p, in_itemsize, w_itemsize, out_itemsize,
                  y_itemsize, packing, vmem_limit):
    tile_budget = vmem_limit - (4 << 20)            # headroom for Mosaic internals
    weight_budget = max(2 << 20, int(0.45 * tile_budget))

    # Output-column tile: whole padded output width if the weight fits resident
    # (streamed exactly once), else largest 128-multiple divisor fitting budget.
    if 2 * N_out_p * N * w_itemsize <= weight_budget:
        tn = N_out_p
    else:
        tn = 128
        for cand in (2048, 1024, 512, 256, 128):
            if N_out_p % cand == 0 and 2 * cand * N * w_itemsize <= weight_budget:
                tn = cand
                break

    gate_chunk_cap = 128
    fixed = (2 * tn * N * w_itemsize                 # weight tile, double-buffered
             + 2 * N * 4 + 2 * tn * 4                # norm weight + bias (tiny)
             + 4 * gate_chunk_cap * N * 4)           # fp32 gate temporaries
    per_row = (2 * 2 * N * in_itemsize               # x, o tiles, double-buffered
               + N * y_itemsize                      # gated-activation scratch
               + 2 * tn * out_itemsize)              # output tile, double-buffered
    tm_raw = max(8, (tile_budget - fixed) // per_row)
    tm_raw = min(int(tm_raw), 2048)

    Mp8 = _round_up(M, packing)
    if tm_raw >= Mp8:
        tm = Mp8
    elif tm_raw >= 128:
        tm = (tm_raw // 128) * 128
    else:
        tm = max(packing, (tm_raw // packing) * packing)

    # For large M keep at least two row tiles so the "parallel" axis can feed
    # both TensorCores on multi-core parts (v7x).
    if M >= 1024:
        half = _round_up((Mp8 + 1) // 2, 128)
        if half >= 128:
            tm = min(tm, half)

    gate_chunk = 128 if (tm % 128 == 0) else tm
    return tm, tn, gate_chunk


def fused_rms_norm_swish_gate_linear(x, o, norm_weight, linear_weight,
                                     linear_bias=None, *, eps=1e-5):
    """out = (RMSNorm(x; norm_weight) * o * sigmoid(o)) @ linear_weight.T + linear_bias."""
    assert x.shape == o.shape
    orig_lead = x.shape[:-1]
    N = x.shape[-1]
    N_out = linear_weight.shape[0]
    assert linear_weight.shape == (N_out, N)

    # Module casts weight/bias to y.dtype (= x.dtype) before F.linear.
    compute_dtype = x.dtype
    out_dtype = x.dtype

    x2 = x.reshape(-1, N)
    o2 = o.reshape(-1, N)
    M = x2.shape[0]

    if norm_weight is None:                         # elementwise_affine=False
        norm_weight = jnp.ones((N,), dtype=compute_dtype)
    nw = norm_weight.reshape(1, N)

    lw = linear_weight
    if lw.dtype != compute_dtype:
        lw = lw.astype(compute_dtype)
    has_bias = linear_bias is not None

    in_itemsize = jnp.dtype(compute_dtype).itemsize
    w_itemsize = jnp.dtype(lw.dtype).itemsize
    out_itemsize = jnp.dtype(out_dtype).itemsize
    y_itemsize = jnp.dtype(compute_dtype).itemsize
    packing = _sublane_packing(compute_dtype)

    physical_vmem = _vmem_capacity_bytes()
    vmem_limit = int(min(100 << 20, physical_vmem - (8 << 20)))

    # Pad output features to a lane-dense multiple of 128.
    N_out_p = max(128, _round_up(N_out, 128))
    if N_out_p != N_out:
        lw = jnp.pad(lw, ((0, N_out_p - N_out), (0, 0)))

    tm, tn, gate_chunk = _choose_tiles(M, N, N_out_p, in_itemsize, w_itemsize,
                                       out_itemsize, y_itemsize, packing,
                                       vmem_limit)

    # Pad rows to a multiple of the row tile (zero rows give finite values and
    # are sliced off afterwards).
    Mp = _round_up(M, tm)
    if Mp != M:
        pad = Mp - M
        x2 = jnp.pad(x2, ((0, pad), (0, 0)))
        o2 = jnp.pad(o2, ((0, pad), (0, 0)))

    in_specs = [
        pl.BlockSpec((tm, N), lambda i, j: (i, 0)),   # x rows
        pl.BlockSpec((tm, N), lambda i, j: (i, 0)),   # o rows (gate)
        pl.BlockSpec((1, N), lambda i, j: (0, 0)),    # norm weight (resident)
        pl.BlockSpec((tn, N), lambda i, j: (j, 0)),   # linear weight, (N_out, N) layout
    ]
    operands = [x2, o2, nw, lw]
    if has_bias:
        lb = linear_bias.reshape(1, N_out)
        if N_out_p != N_out:
            lb = jnp.pad(lb, ((0, 0), (0, N_out_p - N_out)))
        in_specs.append(pl.BlockSpec((1, tn), lambda i, j: (0, j)))
        operands.append(lb)

    grid = (Mp // tm, N_out_p // tn)

    try:
        cost = pl.CostEstimate(
            flops=int(2 * M * N * N_out_p + 10 * M * N),
            transcendentals=int(M * N + M),
            bytes_accessed=int(2 * M * N * in_itemsize
                               + grid[0] * N_out_p * N * w_itemsize
                               + M * N_out_p * out_itemsize),
        )
    except Exception:
        cost = None

    kernel = functools.partial(_rmsnorm_gate_linear_kernel, eps=float(eps),
                               gate_chunk=gate_chunk, has_bias=has_bias)

    out_p = pl.pallas_call(
        kernel,
        out_shape=jax.ShapeDtypeStruct((Mp, N_out_p), out_dtype),
        grid_spec=pltpu.PrefetchScalarGridSpec(
            num_scalar_prefetch=0,
            grid=grid,
            in_specs=in_specs,
            out_specs=pl.BlockSpec((tm, tn), lambda i, j: (i, j)),
            scratch_shapes=[pltpu.VMEM((tm, N), compute_dtype)],  # gated activation
        ),
        compiler_params=pltpu.CompilerParams(
            dimension_semantics=("parallel", "arbitrary"),
            vmem_limit_bytes=vmem_limit,
        ),
        cost_estimate=cost,
    )(*operands)

    out = out_p[:M, :N_out]
    return out.reshape(orig_lead + (N_out,))


def _reference(x, o, norm_weight, linear_weight, linear_bias, eps=1e-5):
    x32 = x.astype(jnp.float32)
    o32 = o.astype(jnp.float32)
    ms = jnp.mean(x32 * x32, axis=-1, keepdims=True)
    y = x32 * lax.rsqrt(ms + eps)
    if norm_weight is not None:
        y = y * norm_weight.astype(jnp.float32)
    y = (y * o32 * jax.nn.sigmoid(o32)).astype(x.dtype)
    w = linear_weight.astype(x.dtype)
    out = jnp.dot(y, w.T, preferred_element_type=jnp.float32)
    if linear_bias is not None:
        out = out + linear_bias.astype(jnp.float32)
    return out.astype(x.dtype)


if __name__ == "__main__":
    # Small shapes consistent with module usage: (batch, seq, hidden) -> (batch, seq, out_features)
    batch, seq, hidden, out_features = 2, 8, 32, 64

    key = jax.random.PRNGKey(0)
    kx, ko, kw, kb = jax.random.split(key, 4)
    x = jax.random.normal(kx, (batch, seq, hidden), dtype=jnp.float32)
    o = jax.random.normal(ko, (batch, seq, hidden), dtype=jnp.float32)

    # Module params: norm weight = ones(hidden) (as in __init__), norm bias = None.
    norm_weight = jnp.ones((hidden,), dtype=jnp.float32)
    # Linear weight/bias are passed into forward() by the caller.
    linear_weight = (jax.random.normal(kw, (out_features, hidden), dtype=jnp.float32)
                     * (1.0 / jnp.sqrt(hidden)))
    linear_bias = jax.random.normal(kb, (out_features,), dtype=jnp.float32) * 0.1

    out = fused_rms_norm_swish_gate_linear(
        x, o, norm_weight, linear_weight, linear_bias, eps=1e-5)
    out = jax.block_until_ready(out)

    ref = _reference(x, o, norm_weight, linear_weight, linear_bias, eps=1e-5)

    assert out.shape == (batch, seq, out_features), out.shape
    assert out.dtype == x.dtype
    assert jnp.allclose(out, ref, atol=2e-3, rtol=2e-3), "mismatch vs reference"

    print("KERNEL_OK")
</pallas_src>

<mosaic_0001>
module attributes {stable_mosaic.version = 11 : i64} {
  func.func @_rmsnorm_gate_linear_kernel(%arg0: i32, %arg1: i32, %arg2: memref<16x32xf32, #tpu.memory_space<vmem>>, %arg3: memref<16x32xf32, #tpu.memory_space<vmem>>, %arg4: memref<1x32xf32, #tpu.memory_space<vmem>>, %arg5: memref<128x32xf32, #tpu.memory_space<vmem>>, %arg6: memref<1x128xf32, #tpu.memory_space<vmem>>, %arg7: memref<16x128xf32, #tpu.memory_space<vmem>>, %arg8: memref<16x32xf32, #tpu.memory_space<vmem>>) attributes {dimension_semantics = [#tpu.dimension_semantics<parallel>, #tpu.dimension_semantics<arbitrary>], iteration_bounds = array<i64: 1, 1>, scalar_prefetch = 0 : i64, scratch_operands = 1 : i64, tpu.core_type = #tpu.core_type<tc>, window_params = [{transform_indices = @transform_0, window_bounds = array<i64: 16, 32>}, {transform_indices = @transform_1, window_bounds = array<i64: 16, 32>}, {pipeline_mode = #tpu.pipeline_mode<synchronous>, transform_indices = @transform_2, window_bounds = array<i64: 1, 32>}, {transform_indices = @transform_3, window_bounds = array<i64: 128, 32>}, {transform_indices = @transform_4, window_bounds = array<i64: 1, 128>}, {transform_indices = @transform_5, window_bounds = array<i64: 16, 128>}]} {
    %c0_i32 = arith.constant 0 : i32
    %0 = arith.cmpi eq, %arg1, %c0_i32 : i32
    %1 = arith.extui %0 : i1 to i32
    %c0_i32_0 = arith.constant 0 : i32
    %2 = arith.cmpi ne, %1, %c0_i32_0 : i32
    scf.if %2 {
      %c0_8 = arith.constant 0 : index
      %c0_9 = arith.constant 0 : index
      %10 = vector.load %arg4[%c0_8, %c0_9] : memref<1x32xf32, #tpu.memory_space<vmem>>, vector<1x32xf32>
      %c0_10 = arith.constant 0 : index
      %c0_11 = arith.constant 0 : index
      %11 = vector.load %arg2[%c0_10, %c0_11] : memref<16x32xf32, #tpu.memory_space<vmem>>, vector<16x32xf32>
      %c0_12 = arith.constant 0 : index
      %c0_13 = arith.constant 0 : index
      %12 = vector.load %arg3[%c0_12, %c0_13] : memref<16x32xf32, #tpu.memory_space<vmem>>, vector<16x32xf32>
      %13 = arith.mulf %11, %11 : vector<16x32xf32>
      %cst_14 = arith.constant dense<0.000000e+00> : vector<16xf32>
      %14 = vector.multi_reduction <add>, %13, %cst_14 [1] : vector<16x32xf32> to vector<16xf32>
      %15 = vector.shape_cast %14 : vector<16xf32> to vector<16x1xf32>
      %cst_15 = arith.constant 3.200000e+01 : f32
      %16 = vector.broadcast %cst_15 : f32 to vector<16x1xf32>
      %17 = arith.divf %15, %16 : vector<16x1xf32>
      %cst_16 = arith.constant 9.99999974E-6 : f32
      %18 = vector.broadcast %cst_16 : f32 to vector<16x1xf32>
      %19 = arith.addf %17, %18 : vector<16x1xf32>
      %20 = math.rsqrt %19 : vector<16x1xf32>
      %21 = vector.broadcast %20 : vector<16x1xf32> to vector<16x32xf32>
      %22 = arith.mulf %11, %21 : vector<16x32xf32>
      %23 = vector.broadcast %10 : vector<1x32xf32> to vector<16x32xf32>
      %24 = arith.mulf %22, %23 : vector<16x32xf32>
      %25 = arith.negf %12 : vector<16x32xf32>
      %26 = math.exp %25 : vector<16x32xf32>
      %cst_17 = arith.constant 1.000000e+00 : f32
      %27 = vector.broadcast %cst_17 : f32 to vector<16x32xf32>
      %28 = arith.addf %27, %26 : vector<16x32xf32>
      %29 = arith.divf %27, %28 : vector<16x32xf32>
      %30 = arith.mulf %12, %29 : vector<16x32xf32>
      %31 = arith.mulf %24, %30 : vector<16x32xf32>
      %c0_18 = arith.constant 0 : index
      %c0_19 = arith.constant 0 : index
      %32 = vector.load %arg8[%c0_18, %c0_19] : memref<16x32xf32, #tpu.memory_space<vmem>>, vector<16x32xf32>
      tpu.vector_store %arg8[%c0_18, %c0_19], %31 {strides = array<i32>} : memref<16x32xf32, #tpu.memory_space<vmem>>, vector<16x32xf32>,
    } else {
    }
    %c0 = arith.constant 0 : index
    %c0_1 = arith.constant 0 : index
    %3 = vector.load %arg8[%c0, %c0_1] : memref<16x32xf32, #tpu.memory_space<vmem>>, vector<16x32xf32>
    %c0_2 = arith.constant 0 : index
    %c0_3 = arith.constant 0 : index
    %4 = vector.load %arg5[%c0_2, %c0_3] : memref<128x32xf32, #tpu.memory_space<vmem>>, vector<128x32xf32>
    %cst = arith.constant dense<0.000000e+00> : vector<16x128xf32>
    %5 = tpu.matmul %3, %4, %cst {dimension_numbers = #tpu.dot_dimension_numbers<[1], [1], [0], [0], [0, 0, 1, 0], [], []>} : vector<16x32xf32>, vector<128x32xf32>, vector<16x128xf32> -> vector<16x128xf32>
    %c0_4 = arith.constant 0 : index
    %c0_5 = arith.constant 0 : index
    %6 = vector.load %arg6[%c0_4, %c0_5] : memref<1x128xf32, #tpu.memory_space<vmem>>, vector<1x128xf32>
    %7 = vector.broadcast %6 : vector<1x128xf32> to vector<16x128xf32>
    %8 = arith.addf %5, %7 : vector<16x128xf32>
    %c0_6 = arith.constant 0 : index
    %c0_7 = arith.constant 0 : index
    %9 = vector.load %arg7[%c0_6, %c0_7] : memref<16x128xf32, #tpu.memory_space<vmem>>, vector<16x128xf32>
    tpu.vector_store %arg7[%c0_6, %c0_7], %8 {strides = array<i32>} : memref<16x128xf32, #tpu.memory_space<vmem>>, vector<16x128xf32>,
    return
  }
  func.func @transform_0(%arg0: i32, %arg1: i32) -> (i32, i32) {
    %c0_i32 = arith.constant 0 : i32
    %c0_i32_0 = arith.constant 0 : i32
    return %arg0, %c0_i32 : i32, i32
  }
  func.func @transform_1(%arg0: i32, %arg1: i32) -> (i32, i32) {
    %c0_i32 = arith.constant 0 : i32
    %c0_i32_0 = arith.constant 0 : i32
    return %arg0, %c0_i32 : i32, i32
  }
  func.func @transform_2(%arg0: i32, %arg1: i32) -> (i32, i32) {
    %c0_i32 = arith.constant 0 : i32
    %c0_i32_0 = arith.constant 0 : i32
    %c0_i32_1 = arith.constant 0 : i32
    return %c0_i32, %c0_i32_0 : i32, i32
  }
  func.func @transform_3(%arg0: i32, %arg1: i32) -> (i32, i32) {
    %c0_i32 = arith.constant 0 : i32
    %c0_i32_0 = arith.constant 0 : i32
    return %arg1, %c0_i32 : i32, i32
  }
  func.func @transform_4(%arg0: i32, %arg1: i32) -> (i32, i32) {
    %c0_i32 = arith.constant 0 : i32
    %c0_i32_0 = arith.constant 0 : i32
    return %c0_i32, %arg1 : i32, i32
  }
  func.func @transform_5(%arg0: i32, %arg1: i32) -> (i32, i32) {
    %c0_i32 = arith.constant 0 : i32
    return %arg0, %arg1 : i32, i32
  }
}

</mosaic_0001>

<bundles_post_ra>
// kernel: tpu_custom_call.1
= control target key start
LH: loop header
LB: loop body
LE: loop exit
PB: predicated region body
PF: predicated region fallthrough
CT: control target
= control target key end

     0   :  { %vm32_vm0 = vcmask 261120   ;;  %s482_s0 = inlined_call_operand.vmem [shape: f32[16,32], index: 0, kind: input, shape index: {}]   ;;  %s483_s1 = inlined_call_operand.vmem [shape: f32[16,32], index: 1, kind: input, shape index: {}]   ;;  %s484_s2 = inlined_call_operand.vmem [shape: f32[1,32], index: 2, kind: input, shape index: {}]   ;;  %s485_s3 = inlined_call_operand.vmem [shape: f32[128,32], index: 3, kind: input, shape index: {}]   ;;  %s486_s4 = inlined_call_operand.vmem [shape: f32[1,128], index: 4, kind: input, shape index: {}]   ;;  %s487_s5 = inlined_call_operand.hbm [shape: f32[16,128], index: 5, kind: output, shape index: {}]  }
   0x1   :  { %v360_v0 = vld [vmem:[%s482_s0] sm:$0xff]  ;;  %v138_v1 = vld [vmem:[%s485_s3 + $0x78] sm:$0xff]  ;;  %v372_v3 = vld [vmem:[%s482_s0 + $0x8] sm:$0xff] }
   0x2   :  { %v30_v2 = vmul.f32 %v360_v0, %v360_v0  ;;  %243 = vmatpush.xpose.msk.msra.mxu0 %vm32_vm0, %v138_v1  ;;  %261 = vmatpush.xpose.msk.msra.mxu1 %vm32_vm0, %v138_v1  ;;  %v137_v4 = vld [vmem:[%s485_s3 + $0x70] sm:$0xff] }
   0x4   :  { %v33_v5 = vsel %vm32_vm0, %v30_v2, 0.0 }
   0x5   :  { %34 = vadd.xlane.f32.xlu0 %v33_v5 }
   0x6   :  { %10 = vsyncpa [#allocation4], 0  ;;  %v31_v6 = vmul.f32 %v372_v3, %v372_v3  ;;  %244 = vmatpush.xpose.msk.msra.mxu0 %vm32_vm0, %v137_v4  ;;  %262 = vmatpush.xpose.msk.msra.mxu1 %vm32_vm0, %v137_v4  ;;  %v136_v7 = vld [vmem:[%s485_s3 + $0x68] sm:$0xff]  ;;  %v135_v9 = vld [vmem:[%s485_s3 + $0x60] sm:$0xff]  ;;  %v323_v15 = vmov 32.0   ;;  %s324_s7 = smov [#allocation3]  }
   0x7   :  { %v134_v10 = vld [vmem:[%s485_s3 + $0x58] sm:$0xff]  ;;  %v133_v11 = vld [vmem:[%s485_s3 + $0x50] sm:$0xff]  ;;  %v132_v12 = vld [vmem:[%s485_s3 + $0x48] sm:$0xff]  ;;  %283 = vrcp.f32 %v323_v15  ;;  %s227_s8 = sshll.u32 %s324_s7, 4  ;;  %s229_s11 = sshll.u32 %s487_s5, 4  ;;  %s228_s8 = int_to_ptr.vmem [resolvable:$true] %s227_s8  ;;  %s230_s11 = int_to_ptr.hbm [resolvable:$true] %s229_s11 }
   0x8   :  { %v36_v8 = vsel %vm32_vm0, %v31_v6, 0.0  ;;  %v131_v13 = vld [vmem:[%s485_s3 + $0x40] sm:$0xff]  ;;  %v130_v16 = vld [vmem:[%s485_s3 + $0x38] sm:$0xff]  ;;  %v129_v18 = vld [vmem:[%s485_s3 + $0x30] sm:$0xff]  ;;  %s325_s12 = smov 128   ;;  %s326_s13 = smov 8  }
   0x9   :  { %v416_v14 = vld [vmem:[%s483_s1] sm:$0xff]  ;;  %v432_v20 = vld [vmem:[%s483_s1 + $0x8] sm:$0xff]  ;;  %v126_v28 = vld [vmem:[%s485_s3 + $0x18] sm:$0xff] }
   0xa   :  { %245 = vmatpush.xpose.msk.msra.mxu0 %vm32_vm0, %v136_v7  ;;  %263 = vmatpush.xpose.msk.msra.mxu1 %vm32_vm0, %v136_v7  ;;  %v241_v17 = vmul.f32 -1.442695, %v416_v14  ;;  %v128_v21 = vld [vmem:[%s485_s3 + $0x28] sm:$0xff]  ;;  %v242_v23 = vmul.f32 -1.442695, %v432_v20  ;;  %v127_v25 = vld [vmem:[%s485_s3 + $0x20] sm:$0xff] }
   0xb   :  { %v125_v31 = vld [vmem:[%s485_s3 + $0x10] sm:$0xff]  ;;  %v124_v35 = vld [vmem:[%s485_s3 + $0x8] sm:$0xff]  ;;  %v123_v40 = vld [vmem:[%s485_s3] sm:$0xff] }
   0xc   :  { %285 = vpow2.f32 %v241_v17  ;;  %v281_v4 = vld [vmem:[%s484_s2] ss:$0 sm:$0xff] }
   0xd   :  { %37 = vadd.xlane.f32.xlu0 %v36_v8  ;;  %v284_v19 = vpop.eup %283  ;;  %287 = vpow2.f32 %v242_v23 }
   0xe   :  { %246 = vmatpush.xpose.msk.msra.mxu0 %vm32_vm0, %v135_v9  ;;  %264 = vmatpush.xpose.msk.msra.mxu1 %vm32_vm0, %v135_v9  ;;  %v40_v22 = vmul.f32 32.0, %v284_v19  ;;  %vm44_vm1 = vweird.f32 %v284_v19 }
  0x10   :  { %v41_v26 = vsub.f32 1.0, %v40_v22 }
  0x12   :  { %247 = vmatpush.xpose.msk.msra.mxu0 %vm32_vm0, %v134_v10  ;;  %265 = vmatpush.xpose.msk.msra.mxu1 %vm32_vm0, %v134_v10  ;;  %v286_v24 = vpop.eup %285  ;;  %v42_v29 = vmul.f32 %v284_v19, %v41_v26  ;;  %v282_v26 = vld [vmem:[%s486_s4] ss:$0 sm:$0xff] }
  0x13   :  { %v83_v27 = vadd.f32 1.0, %v286_v24  ;;  %v288_v30 = vpop.eup %287 }
  0x14   :  { %v43_v32 = vadd.f32 %v284_v19, %v42_v29  ;;  %v84_v33 = vadd.f32 1.0, %v288_v30 }
  0x15   :  { %289 = vrcp.f32 %v83_v27  ;;  %vm90_vm2 = vweird.f32 %v83_v27  ;;  %v96_v49 = vand.u32 2147483648, %v83_v27  ;;  %v94_v52 = vand.u32 2147483647, %v83_v27 }
  0x16   :  { %248 = vmatpush.xpose.msk.msra.mxu0 %vm32_vm0, %v133_v11  ;;  %266 = vmatpush.xpose.msk.msra.mxu1 %vm32_vm0, %v133_v11  ;;  %v45_v36 = vsel %vm44_vm1, %v284_v19, %v43_v32  ;;  %291 = vrcp.f32 %v84_v33  ;;  %vm105_vm7 = vweird.f32 %v84_v33  ;;  %v111_v1 = vand.u32 2147483648, %v84_v33 }
  0x17   :  { %v97_v56 = vor.u32 1.1754944e-38, %v96_v49  ;;  %vm95_vm5 = vcmp.eq.f32.partialorder %v94_v52, 8.507059e+37  ;;  %v109_v6 = vand.u32 2147483647, %v84_v33 }
  0x18   :  { %v112_v11 = vor.u32 1.1754944e-38, %v111_v1 }
  0x19   :  { %vm110_vm12 = vcmp.eq.f32.partialorder %v109_v6, 8.507059e+37 }
  0x1a   :  { %249 = vmatpush.xpose.msk.msra.mxu0 %vm32_vm0, %v132_v12  ;;  %267 = vmatpush.xpose.msk.msra.mxu1 %vm32_vm0, %v132_v12 }
  0x1b   :  { %v290_v34 = vpop.eup %289 }
  0x1c   :  { %v86_v37 = vmul.f32 %v290_v34, %v83_v27  ;;  %v292_v43 = vpop.eup %291  ;;  %vm91_vm3 = vweird.f32 %v290_v34 }
  0x1d   :  { %v101_v46 = vmul.f32 %v292_v43, %v84_v33  ;;  %vm92_vm4 = vmor %vm90_vm2, %vm91_vm3  ;;  %vm106_vm8 = vweird.f32 %v292_v43 }
  0x1e   :  { %250 = vmatpush.xpose.msk.msra.mxu0 %vm32_vm0, %v131_v13  ;;  %268 = vmatpush.xpose.msk.msra.mxu1 %vm32_vm0, %v131_v13  ;;  %v87_v42 = vsub.f32 1.0, %v86_v37  ;;  %vm107_vm11 = vmor %vm105_vm7, %vm106_vm8 }
  0x1f   :  { %v102_v54 = vsub.f32 1.0, %v101_v46 }
  0x20   :  { %v88_v44 = vmul.f32 %v290_v34, %v87_v42 }
  0x21   :  { %v103_v59 = vmul.f32 %v292_v43, %v102_v54 }
  0x22   :  { %251 = vmatpush.xpose.msk.msra.mxu0 %vm32_vm0, %v130_v16  ;;  %269 = vmatpush.xpose.msk.msra.mxu1 %vm32_vm0, %v130_v16  ;;  %v89_v51 = vadd.f32 %v290_v34, %v88_v44 }
  0x23   :  { %v104_v5 = vadd.f32 %v292_v43, %v103_v59 }
  0x24   :  { %v93_v57 = vsel %vm92_vm4, %v290_v34, %v89_v51 }
  0x25   :  { %v98_v62 = vsel %vm95_vm5, %v97_v56, %v93_v57  ;;  %v108_v15 = vsel %vm107_vm11, %v292_v43, %v104_v5 }
  0x26   :  { %252 = vmatpush.xpose.msk.msra.mxu0 %vm32_vm0, %v129_v18  ;;  %270 = vmatpush.xpose.msk.msra.mxu1 %vm32_vm0, %v129_v18  ;;  %v115_v9 = vmul.f32 %v98_v62, %v416_v14  ;;  %v113_v18 = vsel %vm110_vm12, %v112_v11, %v108_v15 }
  0x27   :  { %v116_v22 = vmul.f32 %v113_v18, %v432_v20 }
  0x2a   :  { %253 = vmatpush.xpose.msk.msra.mxu0 %vm32_vm0, %v128_v21  ;;  %271 = vmatpush.xpose.msk.msra.mxu1 %vm32_vm0, %v128_v21 }
  0x2e   :  { %254 = vmatpush.xpose.msk.msra.mxu0 %vm32_vm0, %v127_v25  ;;  %272 = vmatpush.xpose.msk.msra.mxu1 %vm32_vm0, %v127_v25 }
  0x32   :  { %255 = vmatpush.xpose.msk.msra.mxu0 %vm32_vm0, %v126_v28  ;;  %273 = vmatpush.xpose.msk.msra.mxu1 %vm32_vm0, %v126_v28 }
  0x36   :  { %256 = vmatpush.xpose.msk.msra.mxu0 %vm32_vm0, %v125_v31  ;;  %274 = vmatpush.xpose.msk.msra.mxu1 %vm32_vm0, %v125_v31 }
  0x3a   :  { %257 = vmatpush.xpose.msk.msra.mxu0 %vm32_vm0, %v124_v35  ;;  %275 = vmatpush.xpose.msk.msra.mxu1 %vm32_vm0, %v124_v35 }
  0x3e   :  { %258 = vmatpush.xpose.msk.msra.mxu0 %vm32_vm0, %v123_v40  ;;  %276 = vmatpush.xpose.msk.msra.mxu1 %vm32_vm0, %v123_v40 }
  0x78   :  { %v35_v38 = vpop.xlane.xlu0 %34 }
  0x79   :  { %v46_v39 = vmul.f32 %v45_v36, %v35_v38 }
  0x7b   :  { %v48_v41 = vadd.f32 1e-05, %v46_v39 }
  0x7d   :  { %293 = vrsqrt.f32 %v48_v41  ;;  %vm56_vm9 = vweird.f32 %v48_v41 }
  0x80   :  { %v38_v45 = vpop.xlane.xlu0 %37 }
  0x81   :  { %v47_v47 = vmul.f32 %v45_v36, %v38_v45 }
  0x83   :  { %v294_v48 = vpop.eup %293  ;;  %v49_v50 = vadd.f32 1e-05, %v47_v47 }
  0x84   :  { %v51_v53 = vmul.f32 %v294_v48, %v48_v41  ;;  %vm57_vm6 = vweird.f32 %v294_v48 }
  0x85   :  { %295 = vrsqrt.f32 %v49_v50  ;;  %vm58_vm10 = vmor %vm56_vm9, %vm57_vm6  ;;  %vm66_vm14 = vweird.f32 %v49_v50 }
  0x86   :  { %v52_v55 = vmul.f32 %v294_v48, %v51_v53 }
  0x88   :  { %v53_v58 = vmul.f32 0.5, %v52_v55 }
  0x8a   :  { %v54_v60 = vsub.f32 1.5, %v53_v58 }
  0x8b   :  { %v296_v61 = vpop.eup %295 }
  0x8c   :  { %v55_v63 = vmul.f32 %v294_v48, %v54_v60  ;;  %v61_v2 = vmul.f32 %v296_v61, %v49_v50  ;;  %vm67_vm13 = vweird.f32 %v296_v61 }
  0x8d   :  { %vm68_vm15 = vmor %vm66_vm14, %vm67_vm13 }
  0x8e   :  { %v59_v7 = vsel %vm58_vm10, %v294_v48, %v55_v63  ;;  %v62_v8 = vmul.f32 %v296_v61, %v61_v2 }
  0x8f   :  { %v70_v10 = vmul.f32 %v59_v7, %v360_v0 }
  0x90   :  { %v63_v12 = vmul.f32 0.5, %v62_v8 }
  0x91   :  { %v75_v13 = vmul.f32 %v281_v4, %v70_v10 }
  0x92   :  { %v64_v16 = vsub.f32 1.5, %v63_v12 }
  0x93   :  { %v117_v17 = vmul.f32 %v115_v9, %v75_v13 }
  0x94   :  { %v65_v19 = vmul.f32 %v296_v61, %v64_v16 }
  0x95   :  { %119 = vst.msk [vmem:[#allocation2] sm:$0xff] %vm32_vm0, %v117_v17 }
  0x96   :  { %v69_v21 = vsel %vm68_vm15, %v296_v61, %v65_v19 }
  0x97   :  { %v71_v14 = vmul.f32 %v69_v21, %v372_v3 }
  0x99   :  { %v76_v0 = vmul.f32 %v281_v4, %v71_v14 }
  0x9b   :  { %v118_v23 = vmul.f32 %v116_v22, %v76_v0 }
  0x9c   :  { %v121_v24 = vld [vmem:[#allocation2] sm:$0xff] }
  0x9d   :  { %120 = vst.msk [vmem:[#allocation2 + $0x8] sm:$0xff] %vm32_vm0, %v118_v23  ;;  %259 = vmatmul.msk.f32.vlgmr.msra.gmra.mxu0 %vm32_vm0, %v121_v24 }
  0xa4   :  { %v122_v25 = vld [vmem:[#allocation2 + $0x8] sm:$0xff] }
  0xa5   :  { %260 = vmatmul.msk.f32.vlgmr.msra.gmra.mxu1 %vm32_vm0, %v122_v25 }
 0x11a   :  { %v215_v27 = vpop.f32.mrf.mxu0 }
 0x11b   :  { %v216_v28 = vadd.f32 %v282_v26, %v215_v27 }
 0x11d   :  { %221 = vst [vmem:[#allocation3] sm:$0xff] %v216_v28 }
 0x122   :  { %v218_v3 = vpop.f32.mrf.mxu1 }
 0x123   :  { %v219_v20 = vadd.f32 %v282_v26, %v218_v3 }
 0x125   :  { %222 = vst [vmem:[#allocation3 + $0x8] sm:$0xff] %v219_v20 }
 0x126   :  { %235 = dma.vmem_to_hbm [thread:$0]  %s228_s8, 256, %s230_s11, [#allocation4], %s325_s12, %s325_s12, %s326_s13  }
 0x127   :  { %321 = dma.done.wait [#allocation4], 256  }
 0x128   :  { %322 = vsyncadd [#allocation4], 4294967040 }
 0x129   :  { %240 = vsyncpa [#allocation4], 1 }

</bundles_post_ra>
